<compile_context>
chip_gen: v6e
topology: v6e:2x2x1
jax: 0.10.0
libtpu: 0.0.40
codegen_flags: <defaults>
</compile_context>

<pallas_src>
import jax
import jax.numpy as jnp
import numpy as np
from jax.experimental import pallas as pl
from jax.experimental.pallas import tpu as pltpu

EPS = 1e-5


def _silu(v):
    # v * sigmoid(v); approx reciprocal rides the EUP slot (off the VALU critical path).
    return v * pl.reciprocal(1.0 + jnp.exp(-v), approx=True)


def _softplus(v):
    # matches torch.nn.functional.softplus (beta=1, threshold=20)
    return jnp.where(v > 20.0, v, jnp.log1p(jnp.exp(v)))


def _shift_lanes(t, src_offset):
    """Returns s with s[..., j] = t[..., j + src_offset] (zero fill at the edge).

    src_offset is +-1 (the conv's kernel_size=3, padding=1 taps).  When the lane
    width is 128-aligned (production shapes) this uses pltpu.roll on the XLU slot;
    otherwise (tiny demo width) a slice+concat fallback is used.
    """
    d = t.shape[-1]
    if d % 128 == 0:
        lane = jax.lax.broadcasted_iota(jnp.int32, t.shape, t.ndim - 1)
        rolled = pltpu.roll(t, shift=(-src_offset) % d, axis=-1)
        wrapped = (lane == 0) if src_offset < 0 else (lane == d - 1)
        return jnp.where(wrapped, 0.0, rolled)
    zeros = jnp.zeros(t.shape[:-1] + (1,), t.dtype)
    if src_offset < 0:      # value from j-1
        return jnp.concatenate([zeros, t[..., :-1]], axis=-1)
    return jnp.concatenate([t[..., 1:], zeros], axis=-1)   # value from j+1


def mamba_fused_kernel(x_ref, rms_ref, inpDw_ref, inpDb_ref,
                       convw_ref, convb_ref, clw_ref, clb_ref,
                       fcw_ref, fcb_ref, ow_ref, ob_ref,
                       o_ref, act_ref):
    blk = pl.program_id(1)
    nb = pl.num_programs(1)

    # Load this batch-group's input into the carried VMEM activation at block 0.
    @pl.when(blk == 0)
    def _():
        act_ref[...] = x_ref[...].astype(jnp.float32)

    x3 = act_ref[...]                                  # (Bt, L, d) f32, carried across blk
    Bt, L, d = x3.shape
    d2 = 2 * d
    Nst = (fcw_ref.shape[-1] - d2) // 2                # state_size
    x = x3.reshape(Bt * L, d)                          # fold batch into M for the MXU

    # ---- RMSNorm over the feature dim ----
    ms = jnp.mean(x * x, axis=-1, keepdims=True)
    xn = x * jax.lax.rsqrt(ms + EPS) * rms_ref[0]                       # (Bt*L, d)

    # ---- fused inp_proj (d->2d) and D (d->2d): one (d, 4d) bf16 matmul ----
    pd = (jnp.dot(xn.astype(jnp.bfloat16), inpDw_ref[0],
                  preferred_element_type=jnp.float32) + inpDb_ref[0])   # (Bt*L, 4d)
    xp = pd[:, :d2]                                                      # inp_proj(xn)
    res = pd[:, d2:]                                                     # D(xn)

    # ---- Conv1d: channels=L, spatial=2d, kernel=3, padding=1 ----
    # All 3 taps fused into one batched (3L, L) @ (L, 2d) matmul per sequence,
    # then the +-1 spatial shifts are applied with roll/concat (no dense shift mats).
    xp3 = xp.reshape(Bt, L, d2).astype(jnp.bfloat16)
    convw = jnp.broadcast_to(convw_ref[...], (Bt, 3 * L, L))             # bf16
    t3 = jnp.einsum('bol,bld->bod', convw, xp3,
                    preferred_element_type=jnp.float32)                  # (Bt, 3L, 2d)
    xc3 = (_shift_lanes(t3[:, :L], -1)        # tap 0 uses x[j-1]
           + t3[:, L:2 * L]                   # tap 1 uses x[j]
           + _shift_lanes(t3[:, 2 * L:], 1)   # tap 2 uses x[j+1]
           + convb_ref[...])                                             # (Bt, L, 2d)
    xca = _silu(xc3.reshape(Bt * L, d2))

    # ---- conv_linear: 2d -> 2d ----
    xco = (jnp.dot(xca.astype(jnp.bfloat16), clw_ref[0],
                   preferred_element_type=jnp.float32) + clb_ref[0])     # (Bt*L, 2d)

    # ---- S6 with h == 0:  y = x * softplus(fc1(x)) * sum_n(fc3(x)_n * fc2(x)_n) ----
    fc = (jnp.dot(xco.astype(jnp.bfloat16), fcw_ref[0],
                  preferred_element_type=jnp.float32) + fcb_ref[0])      # (Bt*L, 2d+2N)
    delta = _softplus(fc[:, :d2])
    Bm = fc[:, d2:d2 + Nst]
    Cm = fc[:, d2 + Nst:]
    cb = jnp.sum(Cm * Bm, axis=-1, keepdims=True)                        # (Bt*L, 1)
    y = xco * delta * cb                                                 # (Bt*L, 2d)

    # ---- gate + out_proj ----
    comb = _silu(y) * _silu(res)                                         # (Bt*L, 2d)
    xo = (jnp.dot(comb.astype(jnp.bfloat16), ow_ref[0],
                  preferred_element_type=jnp.float32) + ob_ref[0])       # (Bt*L, d)
    xo3 = xo.reshape(Bt, L, d)

    act_ref[...] = xo3                         # carry to the next MambaBlock (f32)

    @pl.when(blk == nb - 1)
    def _():
        o_ref[...] = xo3.astype(o_ref.dtype)


PACKED_ORDER = ['rms', 'inpD_w', 'inpD_b', 'conv_w', 'conv_b',
                'cl_w', 'cl_b', 'fc_w', 'fc_b', 'out_w', 'out_b']


def pack_block_params(blocks):
    """Stack the blocks' weights along a leading block axis, pre-fuse the small
    projections (inp_proj|D and fc1|fc2|fc3) along their output axes, and store
    matmul weights in bf16 (biases / RMS scale stay f32)."""
    def stack(fn, dtype=jnp.float32):
        return jnp.stack([fn(p) for p in blocks], axis=0).astype(dtype)

    bf16 = jnp.bfloat16
    return {
        'rms':    stack(lambda p: p['rms_w']),                                              # (nb, 1, d)
        'inpD_w': stack(lambda p: jnp.concatenate([p['inp_w'], p['D_w']], axis=1), bf16),   # (nb, d, 4d)
        'inpD_b': stack(lambda p: jnp.concatenate([p['inp_b'], p['D_b']], axis=1)),         # (nb, 1, 4d)
        'conv_w': stack(lambda p: p['conv_w'].reshape(-1, p['conv_w'].shape[-1]), bf16),    # (nb, 3L, L)
        'conv_b': stack(lambda p: p['conv_b']),                                             # (nb, L, 1)
        'cl_w':   stack(lambda p: p['convlin_w'], bf16),                                    # (nb, 2d, 2d)
        'cl_b':   stack(lambda p: p['convlin_b']),                                          # (nb, 1, 2d)
        'fc_w':   stack(lambda p: jnp.concatenate(
            [p['fc1_w'], p['fc2_w'], p['fc3_w']], axis=1), bf16),                           # (nb, 2d, 2d+2N)
        'fc_b':   stack(lambda p: jnp.concatenate(
            [p['fc1_b'], p['fc2_b'], p['fc3_b']], axis=1)),                                 # (nb, 1, 2d+2N)
        'out_w':  stack(lambda p: p['out_w'], bf16),                                        # (nb, 2d, d)
        'out_b':  stack(lambda p: p['out_b']),                                              # (nb, 1, d)
    }


def mamba_forward(x, packed, *, block_batch=1):
    """Runs all MambaBlocks in a single fused pallas_call.

    grid = (B // block_batch, num_blocks): batch groups are 'parallel' (megacore),
    the block axis is 'arbitrary' so only one block's weights are resident at a
    time (the pipeline prefetches block b+1's weights under block b's compute).
    """
    B, L, d = x.shape
    nb = packed['rms'].shape[0]
    assert B % block_batch == 0, "batch must be divisible by block_batch"
    args = [packed[k] for k in PACKED_ORDER]

    def wspec(a):
        nd = a.ndim
        return pl.BlockSpec((1,) + a.shape[1:],
                            lambda b, k, _nd=nd: (k,) + (0,) * (_nd - 1))

    in_specs = ([pl.BlockSpec((block_batch, L, d), lambda b, k: (b, 0, 0))]
                + [wspec(a) for a in args])
    return pl.pallas_call(
        mamba_fused_kernel,
        out_shape=jax.ShapeDtypeStruct((B, L, d), x.dtype),
        grid=(B // block_batch, nb),
        in_specs=in_specs,
        out_specs=pl.BlockSpec((block_batch, L, d), lambda b, k: (b, 0, 0)),
        scratch_shapes=[pltpu.VMEM((block_batch, L, d), jnp.float32)],
        compiler_params=pltpu.CompilerParams(
            dimension_semantics=("parallel", "arbitrary"),
            vmem_limit_bytes=32 * 1024 * 1024),
    )(x, *args)


def init_block_params(key, L, d, N):
    d2 = 2 * d
    ks = jax.random.split(key, 16)

    def n(k, shape, s=0.2):
        return (jax.random.normal(k, shape, jnp.float32) * s).astype(jnp.float32)

    return {
        'rms_w': jnp.ones((1, d), jnp.float32),
        'inp_w': n(ks[0], (d, d2)), 'inp_b': n(ks[1], (1, d2)),
        'conv_w': n(ks[2], (3, L, L)), 'conv_b': n(ks[3], (L, 1)),
        'convlin_w': n(ks[4], (d2, d2)), 'convlin_b': n(ks[5], (1, d2)),
        'fc1_w': n(ks[6], (d2, d2)), 'fc1_b': n(ks[7], (1, d2)),
        'fc2_w': n(ks[8], (d2, N)), 'fc2_b': n(ks[9], (1, N)),
        'fc3_w': n(ks[10], (d2, N)), 'fc3_b': n(ks[11], (1, N)),
        'D_w': n(ks[12], (d, d2)), 'D_b': n(ks[13], (1, d2)),
        'out_w': n(ks[14], (d2, d)),
        'out_b': jnp.ones((1, d), jnp.float32),   # nn.init.constant_(out_proj.bias, 1.0)
    }


def ref_block(x, p):
    # pure-JAX f32 reference of one MambaBlock for correctness checking
    ms = jnp.mean(x * x, axis=-1, keepdims=True)
    xn = x * jax.lax.rsqrt(ms + EPS) * p['rms_w'][0]
    xp = xn @ p['inp_w'] + p['inp_b'][0]                        # (B, L, 2d)
    B, L, d2 = xp.shape
    xpad = jnp.pad(xp, ((0, 0), (0, 0), (1, 1)))
    xc = sum(jnp.einsum('oi,bij->boj', p['conv_w'][k], xpad[:, :, k:k + d2]) for k in range(3))
    xc = xc + p['conv_b'].reshape(1, L, 1)
    xca = jax.nn.silu(xc)
    xco = xca @ p['convlin_w'] + p['convlin_b'][0]
    Bm = xco @ p['fc2_w'] + p['fc2_b'][0]
    Cm = xco @ p['fc3_w'] + p['fc3_b'][0]
    delta = jax.nn.softplus(xco @ p['fc1_w'] + p['fc1_b'][0])
    y = xco * delta * jnp.sum(Cm * Bm, axis=-1, keepdims=True)
    x_act = jax.nn.silu(y)
    x_res = jax.nn.silu(xn @ p['D_w'] + p['D_b'][0])
    return (x_act * x_res) @ p['out_w'] + p['out_b'][0]


if __name__ == "__main__":
    # small shapes consistent with the module: batch=4, seq_len=8, d_model=8, state_size=16
    # (block_batch=2 -> 2 parallel grid steps so both v7x TensorCores get work)
    B, L, d, N = 4, 8, 8, 16
    Bt = 2
    key = jax.random.PRNGKey(0)
    kx, k1, k2, k3 = jax.random.split(key, 4)
    x = jax.random.normal(kx, (B, L, d), jnp.float32)
    blocks = [init_block_params(k, L, d, N) for k in (k1, k2, k3)]
    packed = pack_block_params(blocks)

    out = jax.block_until_ready(mamba_forward(x, packed, block_batch=Bt))

    ref = x
    for p in blocks:
        ref = ref_block(ref, p)
    # bf16 matmul inputs + approx reciprocal -> slightly looser tolerance than f32.
    np.testing.assert_allclose(np.asarray(out), np.asarray(ref), rtol=3e-2, atol=3e-2)

    print("KERNEL_OK")
</pallas_src>

<mosaic_0001>
module attributes {stable_mosaic.version = 11 : i64} {
  func.func @mamba_fused_kernel(%arg0: i32, %arg1: i32, %arg2: memref<2x8x8xf32, #tpu.memory_space<vmem>>, %arg3: memref<1x1x8xf32, #tpu.memory_space<vmem>>, %arg4: memref<1x8x32xbf16, #tpu.memory_space<vmem>>, %arg5: memref<1x1x32xf32, #tpu.memory_space<vmem>>, %arg6: memref<1x24x8xbf16, #tpu.memory_space<vmem>>, %arg7: memref<1x8x1xf32, #tpu.memory_space<vmem>>, %arg8: memref<1x16x16xbf16, #tpu.memory_space<vmem>>, %arg9: memref<1x1x16xf32, #tpu.memory_space<vmem>>, %arg10: memref<1x16x48xbf16, #tpu.memory_space<vmem>>, %arg11: memref<1x1x48xf32, #tpu.memory_space<vmem>>, %arg12: memref<1x16x8xbf16, #tpu.memory_space<vmem>>, %arg13: memref<1x1x8xf32, #tpu.memory_space<vmem>>, %arg14: memref<2x8x8xf32, #tpu.memory_space<vmem>>, %arg15: memref<2x8x8xf32, #tpu.memory_space<vmem>>) attributes {dimension_semantics = [#tpu.dimension_semantics<parallel>, #tpu.dimension_semantics<arbitrary>], iteration_bounds = array<i64: 2, 3>, scalar_prefetch = 0 : i64, scratch_operands = 1 : i64, tpu.core_type = #tpu.core_type<tc>, window_params = [{transform_indices = @transform_0, window_bounds = array<i64: 2, 8, 8>}, {transform_indices = @transform_1, window_bounds = array<i64: 1, 1, 8>}, {transform_indices = @transform_2, window_bounds = array<i64: 1, 8, 32>}, {transform_indices = @transform_3, window_bounds = array<i64: 1, 1, 32>}, {transform_indices = @transform_4, window_bounds = array<i64: 1, 24, 8>}, {transform_indices = @transform_5, window_bounds = array<i64: 1, 8, 1>}, {transform_indices = @transform_6, window_bounds = array<i64: 1, 16, 16>}, {transform_indices = @transform_7, window_bounds = array<i64: 1, 1, 16>}, {transform_indices = @transform_8, window_bounds = array<i64: 1, 16, 48>}, {transform_indices = @transform_9, window_bounds = array<i64: 1, 1, 48>}, {transform_indices = @transform_10, window_bounds = array<i64: 1, 16, 8>}, {transform_indices = @transform_11, window_bounds = array<i64: 1, 1, 8>}, {transform_indices = @transform_12, window_bounds = array<i64: 2, 8, 8>}]} {
    %c0_i32 = arith.constant 0 : i32
    %0 = arith.cmpi eq, %arg1, %c0_i32 : i32
    %1 = arith.extui %0 : i1 to i32
    %c0_i32_0 = arith.constant 0 : i32
    %2 = arith.cmpi ne, %1, %c0_i32_0 : i32
    scf.if %2 {
      %c0_57 = arith.constant 0 : index
      %c0_58 = arith.constant 0 : index
      %c0_59 = arith.constant 0 : index
      %115 = vector.load %arg2[%c0_57, %c0_58, %c0_59] : memref<2x8x8xf32, #tpu.memory_space<vmem>>, vector<2x8x8xf32>
      %c0_60 = arith.constant 0 : index
      %c0_61 = arith.constant 0 : index
      %c0_62 = arith.constant 0 : index
      %116 = vector.load %arg15[%c0_60, %c0_61, %c0_62] : memref<2x8x8xf32, #tpu.memory_space<vmem>>, vector<2x8x8xf32>
      tpu.vector_store %arg15[%c0_60, %c0_61, %c0_62], %115 {strides = array<i32>} : memref<2x8x8xf32, #tpu.memory_space<vmem>>, vector<2x8x8xf32>,
    } else {
    }
    %c0 = arith.constant 0 : index
    %c0_1 = arith.constant 0 : index
    %c0_2 = arith.constant 0 : index
    %3 = vector.load %arg15[%c0, %c0_1, %c0_2] : memref<2x8x8xf32, #tpu.memory_space<vmem>>, vector<2x8x8xf32>
    %4 = vector.shape_cast %3 : vector<2x8x8xf32> to vector<16x8xf32>
    %5 = arith.mulf %4, %4 : vector<16x8xf32>
    %cst = arith.constant dense<0.000000e+00> : vector<16xf32>
    %6 = vector.multi_reduction <add>, %5, %cst [1] : vector<16x8xf32> to vector<16xf32>
    %7 = vector.shape_cast %6 : vector<16xf32> to vector<16x1xf32>
    %cst_3 = arith.constant 8.000000e+00 : f32
    %8 = vector.broadcast %cst_3 : f32 to vector<16x1xf32>
    %9 = arith.divf %7, %8 : vector<16x1xf32>
    %cst_4 = arith.constant 9.99999974E-6 : f32
    %10 = vector.broadcast %cst_4 : f32 to vector<16x1xf32>
    %11 = arith.addf %9, %10 : vector<16x1xf32>
    %12 = math.rsqrt %11 : vector<16x1xf32>
    %13 = vector.broadcast %12 : vector<16x1xf32> to vector<16x8xf32>
    %14 = arith.mulf %4, %13 : vector<16x8xf32>
    %c0_5 = arith.constant 0 : index
    %c0_6 = arith.constant 0 : index
    %c0_7 = arith.constant 0 : index
    %15 = vector.load %arg3[%c0_5, %c0_6, %c0_7] : memref<1x1x8xf32, #tpu.memory_space<vmem>>, vector<1x1x8xf32>
    %16 = vector.shape_cast %15 : vector<1x1x8xf32> to vector<1x8xf32>
    %17 = vector.broadcast %16 : vector<1x8xf32> to vector<16x8xf32>
    %18 = arith.mulf %14, %17 : vector<16x8xf32>
    %19 = arith.truncf %18 : vector<16x8xf32> to vector<16x8xbf16>
    %c0_8 = arith.constant 0 : index
    %c0_9 = arith.constant 0 : index
    %c0_10 = arith.constant 0 : index
    %20 = vector.load %arg4[%c0_8, %c0_9, %c0_10] : memref<1x8x32xbf16, #tpu.memory_space<vmem>>, vector<1x8x32xbf16>
    %21 = vector.shape_cast %20 : vector<1x8x32xbf16> to vector<8x32xbf16>
    %cst_11 = arith.constant dense<0.000000e+00> : vector<16x32xf32>
    %22 = tpu.matmul %19, %21, %cst_11 {dimension_numbers = #tpu.dot_dimension_numbers<[1], [0], [0], [1], [0, 0, 1, 1], [], []>} : vector<16x8xbf16>, vector<8x32xbf16>, vector<16x32xf32> -> vector<16x32xf32>
    %c0_12 = arith.constant 0 : index
    %c0_13 = arith.constant 0 : index
    %c0_14 = arith.constant 0 : index
    %23 = vector.load %arg5[%c0_12, %c0_13, %c0_14] : memref<1x1x32xf32, #tpu.memory_space<vmem>>, vector<1x1x32xf32>
    %24 = vector.shape_cast %23 : vector<1x1x32xf32> to vector<1x32xf32>
    %25 = vector.broadcast %24 : vector<1x32xf32> to vector<16x32xf32>
    %26 = arith.addf %22, %25 : vector<16x32xf32>
    %27 = vector.extract_strided_slice %26 {offsets = [0, 0], sizes = [16, 16], strides = [1, 1]} : vector<16x32xf32> to vector<16x16xf32>
    %28 = vector.extract_strided_slice %26 {offsets = [0, 16], sizes = [16, 16], strides = [1, 1]} : vector<16x32xf32> to vector<16x16xf32>
    %29 = vector.shape_cast %27 : vector<16x16xf32> to vector<2x8x16xf32>
    %30 = arith.truncf %29 : vector<2x8x16xf32> to vector<2x8x16xbf16>
    %c0_15 = arith.constant 0 : index
    %c0_16 = arith.constant 0 : index
    %c0_17 = arith.constant 0 : index
    %31 = vector.load %arg6[%c0_15, %c0_16, %c0_17] : memref<1x24x8xbf16, #tpu.memory_space<vmem>>, vector<1x24x8xbf16>
    %32 = vector.shape_cast %31 : vector<1x24x8xbf16> to vector<1x24x8xbf16>
    %33 = vector.broadcast %32 : vector<1x24x8xbf16> to vector<2x24x8xbf16>
    "tpu.trace_start"() <{level = 10 : i32, message = "bol,bld->bod"}> : () -> ()
    %cst_18 = arith.constant dense<0.000000e+00> : vector<2x24x16xf32>
    %34 = tpu.matmul %33, %30, %cst_18 {dimension_numbers = #tpu.dot_dimension_numbers<[2], [1], [1], [2], [0, 0, 0, 1, 1, 2], [0], [0]>} : vector<2x24x8xbf16>, vector<2x8x16xbf16>, vector<2x24x16xf32> -> vector<2x24x16xf32>
    "tpu.trace_stop"() : () -> ()
    %35 = vector.extract_strided_slice %34 {offsets = [0, 0, 0], sizes = [2, 8, 16], strides = [1, 1, 1]} : vector<2x24x16xf32> to vector<2x8x16xf32>
    %cst_19 = arith.constant 0.000000e+00 : f32
    %36 = vector.broadcast %cst_19 : f32 to vector<2x8x1xf32>
    %37 = vector.extract_strided_slice %35 {offsets = [0, 0, 0], sizes = [2, 8, 15], strides = [1, 1, 1]} : vector<2x8x16xf32> to vector<2x8x15xf32>
    %38 = tpu.concatenate %36, %37 in 2 : vector<2x8x1xf32>, vector<2x8x15xf32> -> vector<2x8x16xf32>
    %39 = vector.extract_strided_slice %34 {offsets = [0, 8, 0], sizes = [2, 8, 16], strides = [1, 1, 1]} : vector<2x24x16xf32> to vector<2x8x16xf32>
    %40 = arith.addf %38, %39 : vector<2x8x16xf32>
    %41 = vector.extract_strided_slice %34 {offsets = [0, 16, 0], sizes = [2, 8, 16], strides = [1, 1, 1]} : vector<2x24x16xf32> to vector<2x8x16xf32>
    %cst_20 = arith.constant 0.000000e+00 : f32
    %42 = vector.broadcast %cst_20 : f32 to vector<2x8x1xf32>
    %43 = vector.extract_strided_slice %41 {offsets = [0, 0, 1], sizes = [2, 8, 15], strides = [1, 1, 1]} : vector<2x8x16xf32> to vector<2x8x15xf32>
    %44 = tpu.concatenate %43, %42 in 2 : vector<2x8x15xf32>, vector<2x8x1xf32> -> vector<2x8x16xf32>
    %45 = arith.addf %40, %44 : vector<2x8x16xf32>
    %c0_21 = arith.constant 0 : index
    %c0_22 = arith.constant 0 : index
    %c0_23 = arith.constant 0 : index
    %46 = vector.load %arg7[%c0_21, %c0_22, %c0_23] : memref<1x8x1xf32, #tpu.memory_space<vmem>>, vector<1x8x1xf32>
    %47 = vector.broadcast %46 : vector<1x8x1xf32> to vector<2x8x16xf32>
    %48 = arith.addf %45, %47 : vector<2x8x16xf32>
    %49 = vector.shape_cast %48 : vector<2x8x16xf32> to vector<16x16xf32>
    %cst_24 = arith.constant 0.000000e+00 : f32
    %50 = vector.broadcast %cst_24 : f32 to vector<16x16xf32>
    %51 = arith.subf %50, %49 : vector<16x16xf32>
    %52 = math.exp %51 : vector<16x16xf32>
    %cst_25 = arith.constant 1.000000e+00 : f32
    %53 = vector.broadcast %cst_25 : f32 to vector<16x16xf32>
    %54 = arith.addf %53, %52 : vector<16x16xf32>
    %55 = tpu.reciprocal %54 {approx = true} : vector<16x16xf32> -> vector<16x16xf32>
    %56 = arith.mulf %49, %55 : vector<16x16xf32>
    %57 = arith.truncf %56 : vector<16x16xf32> to vector<16x16xbf16>
    %c0_26 = arith.constant 0 : index
    %c0_27 = arith.constant 0 : index
    %c0_28 = arith.constant 0 : index
    %58 = vector.load %arg8[%c0_26, %c0_27, %c0_28] : memref<1x16x16xbf16, #tpu.memory_space<vmem>>, vector<1x16x16xbf16>
    %59 = vector.shape_cast %58 : vector<1x16x16xbf16> to vector<16x16xbf16>
    %cst_29 = arith.constant dense<0.000000e+00> : vector<16x16xf32>
    %60 = tpu.matmul %57, %59, %cst_29 {dimension_numbers = #tpu.dot_dimension_numbers<[1], [0], [0], [1], [0, 0, 1, 1], [], []>} : vector<16x16xbf16>, vector<16x16xbf16>, vector<16x16xf32> -> vector<16x16xf32>
    %c0_30 = arith.constant 0 : index
    %c0_31 = arith.constant 0 : index
    %c0_32 = arith.constant 0 : index
    %61 = vector.load %arg9[%c0_30, %c0_31, %c0_32] : memref<1x1x16xf32, #tpu.memory_space<vmem>>, vector<1x1x16xf32>
    %62 = vector.shape_cast %61 : vector<1x1x16xf32> to vector<1x16xf32>
    %63 = vector.broadcast %62 : vector<1x16xf32> to vector<16x16xf32>
    %64 = arith.addf %60, %63 : vector<16x16xf32>
    %65 = arith.truncf %64 : vector<16x16xf32> to vector<16x16xbf16>
    %c0_33 = arith.constant 0 : index
    %c0_34 = arith.constant 0 : index
    %c0_35 = arith.constant 0 : index
    %66 = vector.load %arg10[%c0_33, %c0_34, %c0_35] : memref<1x16x48xbf16, #tpu.memory_space<vmem>>, vector<1x16x48xbf16>
    %67 = vector.shape_cast %66 : vector<1x16x48xbf16> to vector<16x48xbf16>
    %cst_36 = arith.constant dense<0.000000e+00> : vector<16x48xf32>
    %68 = tpu.matmul %65, %67, %cst_36 {dimension_numbers = #tpu.dot_dimension_numbers<[1], [0], [0], [1], [0, 0, 1, 1], [], []>} : vector<16x16xbf16>, vector<16x48xbf16>, vector<16x48xf32> -> vector<16x48xf32>
    %c0_37 = arith.constant 0 : index
    %c0_38 = arith.constant 0 : index
    %c0_39 = arith.constant 0 : index
    %69 = vector.load %arg11[%c0_37, %c0_38, %c0_39] : memref<1x1x48xf32, #tpu.memory_space<vmem>>, vector<1x1x48xf32>
    %70 = vector.shape_cast %69 : vector<1x1x48xf32> to vector<1x48xf32>
    %71 = vector.broadcast %70 : vector<1x48xf32> to vector<16x48xf32>
    %72 = arith.addf %68, %71 : vector<16x48xf32>
    %73 = vector.extract_strided_slice %72 {offsets = [0, 0], sizes = [16, 16], strides = [1, 1]} : vector<16x48xf32> to vector<16x16xf32>
    %cst_40 = arith.constant 2.000000e+01 : f32
    %74 = vector.broadcast %cst_40 : f32 to vector<16x16xf32>
    %75 = arith.cmpf ogt, %73, %74 : vector<16x16xf32>
    %76 = math.exp %73 : vector<16x16xf32>
    %77 = math.log1p %76 : vector<16x16xf32>
    %78 = arith.select %75, %73, %77 : vector<16x16xi1>, vector<16x16xf32>
    %79 = vector.extract_strided_slice %72 {offsets = [0, 16], sizes = [16, 16], strides = [1, 1]} : vector<16x48xf32> to vector<16x16xf32>
    %80 = vector.extract_strided_slice %72 {offsets = [0, 32], sizes = [16, 16], strides = [1, 1]} : vector<16x48xf32> to vector<16x16xf32>
    %81 = arith.mulf %80, %79 : vector<16x16xf32>
    %cst_41 = arith.constant dense<0.000000e+00> : vector<16xf32>
    %82 = vector.multi_reduction <add>, %81, %cst_41 [1] : vector<16x16xf32> to vector<16xf32>
    %83 = vector.shape_cast %82 : vector<16xf32> to vector<16x1xf32>
    %84 = arith.mulf %64, %78 : vector<16x16xf32>
    %85 = vector.broadcast %83 : vector<16x1xf32> to vector<16x16xf32>
    %86 = arith.mulf %84, %85 : vector<16x16xf32>
    %cst_42 = arith.constant 0.000000e+00 : f32
    %87 = vector.broadcast %cst_42 : f32 to vector<16x16xf32>
    %88 = arith.subf %87, %86 : vector<16x16xf32>
    %89 = math.exp %88 : vector<16x16xf32>
    %cst_43 = arith.constant 1.000000e+00 : f32
    %90 = vector.broadcast %cst_43 : f32 to vector<16x16xf32>
    %91 = arith.addf %90, %89 : vector<16x16xf32>
    %92 = tpu.reciprocal %91 {approx = true} : vector<16x16xf32> -> vector<16x16xf32>
    %93 = arith.mulf %86, %92 : vector<16x16xf32>
    %cst_44 = arith.constant 0.000000e+00 : f32
    %94 = vector.broadcast %cst_44 : f32 to vector<16x16xf32>
    %95 = arith.subf %94, %28 : vector<16x16xf32>
    %96 = math.exp %95 : vector<16x16xf32>
    %cst_45 = arith.constant 1.000000e+00 : f32
    %97 = vector.broadcast %cst_45 : f32 to vector<16x16xf32>
    %98 = arith.addf %97, %96 : vector<16x16xf32>
    %99 = tpu.reciprocal %98 {approx = true} : vector<16x16xf32> -> vector<16x16xf32>
    %100 = arith.mulf %28, %99 : vector<16x16xf32>
    %101 = arith.mulf %93, %100 : vector<16x16xf32>
    %102 = arith.truncf %101 : vector<16x16xf32> to vector<16x16xbf16>
    %c0_46 = arith.constant 0 : index
    %c0_47 = arith.constant 0 : index
    %c0_48 = arith.constant 0 : index
    %103 = vector.load %arg12[%c0_46, %c0_47, %c0_48] : memref<1x16x8xbf16, #tpu.memory_space<vmem>>, vector<1x16x8xbf16>
    %104 = vector.shape_cast %103 : vector<1x16x8xbf16> to vector<16x8xbf16>
    %cst_49 = arith.constant dense<0.000000e+00> : vector<16x8xf32>
    %105 = tpu.matmul %102, %104, %cst_49 {dimension_numbers = #tpu.dot_dimension_numbers<[1], [0], [0], [1], [0, 0, 1, 1], [], []>} : vector<16x16xbf16>, vector<16x8xbf16>, vector<16x8xf32> -> vector<16x8xf32>
    %c0_50 = arith.constant 0 : index
    %c0_51 = arith.constant 0 : index
    %c0_52 = arith.constant 0 : index
    %106 = vector.load %arg13[%c0_50, %c0_51, %c0_52] : memref<1x1x8xf32, #tpu.memory_space<vmem>>, vector<1x1x8xf32>
    %107 = vector.shape_cast %106 : vector<1x1x8xf32> to vector<1x8xf32>
    %108 = vector.broadcast %107 : vector<1x8xf32> to vector<16x8xf32>
    %109 = arith.addf %105, %108 : vector<16x8xf32>
    %110 = vector.shape_cast %109 : vector<16x8xf32> to vector<2x8x8xf32>
    %c0_53 = arith.constant 0 : index
    %c0_54 = arith.constant 0 : index
    %c0_55 = arith.constant 0 : index
    %111 = vector.load %arg15[%c0_53, %c0_54, %c0_55] : memref<2x8x8xf32, #tpu.memory_space<vmem>>, vector<2x8x8xf32>
    tpu.vector_store %arg15[%c0_53, %c0_54, %c0_55], %110 {strides = array<i32>} : memref<2x8x8xf32, #tpu.memory_space<vmem>>, vector<2x8x8xf32>,
    %c2_i32 = arith.constant 2 : i32
    %112 = arith.cmpi eq, %arg1, %c2_i32 : i32
    %113 = arith.extui %112 : i1 to i32
    %c0_i32_56 = arith.constant 0 : i32
    %114 = arith.cmpi ne, %113, %c0_i32_56 : i32
    scf.if %114 {
      %c0_57 = arith.constant 0 : index
      %c0_58 = arith.constant 0 : index
      %c0_59 = arith.constant 0 : index
      %115 = vector.load %arg14[%c0_57, %c0_58, %c0_59] : memref<2x8x8xf32, #tpu.memory_space<vmem>>, vector<2x8x8xf32>
      tpu.vector_store %arg14[%c0_57, %c0_58, %c0_59], %110 {strides = array<i32>} : memref<2x8x8xf32, #tpu.memory_space<vmem>>, vector<2x8x8xf32>,
    } else {
    }
    return
  }
  func.func @transform_0(%arg0: i32, %arg1: i32) -> (i32, i32, i32) {
    %c0_i32 = arith.constant 0 : i32
    %c0_i32_0 = arith.constant 0 : i32
    %c0_i32_1 = arith.constant 0 : i32
    return %arg0, %c0_i32, %c0_i32_0 : i32, i32, i32
  }
  func.func @transform_1(%arg0: i32, %arg1: i32) -> (i32, i32, i32) {
    %c0_i32 = arith.constant 0 : i32
    %c0_i32_0 = arith.constant 0 : i32
    %c0_i32_1 = arith.constant 0 : i32
    return %arg1, %c0_i32, %c0_i32_0 : i32, i32, i32
  }
  func.func @transform_2(%arg0: i32, %arg1: i32) -> (i32, i32, i32) {
    %c0_i32 = arith.constant 0 : i32
    %c0_i32_0 = arith.constant 0 : i32
    %c0_i32_1 = arith.constant 0 : i32
    return %arg1, %c0_i32, %c0_i32_0 : i32, i32, i32
  }
  func.func @transform_3(%arg0: i32, %arg1: i32) -> (i32, i32, i32) {
    %c0_i32 = arith.constant 0 : i32
    %c0_i32_0 = arith.constant 0 : i32
    %c0_i32_1 = arith.constant 0 : i32
    return %arg1, %c0_i32, %c0_i32_0 : i32, i32, i32
  }
  func.func @transform_4(%arg0: i32, %arg1: i32) -> (i32, i32, i32) {
    %c0_i32 = arith.constant 0 : i32
    %c0_i32_0 = arith.constant 0 : i32
    %c0_i32_1 = arith.constant 0 : i32
    return %arg1, %c0_i32, %c0_i32_0 : i32, i32, i32
  }
  func.func @transform_5(%arg0: i32, %arg1: i32) -> (i32, i32, i32) {
    %c0_i32 = arith.constant 0 : i32
    %c0_i32_0 = arith.constant 0 : i32
    %c0_i32_1 = arith.constant 0 : i32
    return %arg1, %c0_i32, %c0_i32_0 : i32, i32, i32
  }
  func.func @transform_6(%arg0: i32, %arg1: i32) -> (i32, i32, i32) {
    %c0_i32 = arith.constant 0 : i32
    %c0_i32_0 = arith.constant 0 : i32
    %c0_i32_1 = arith.constant 0 : i32
    return %arg1, %c0_i32, %c0_i32_0 : i32, i32, i32
  }
  func.func @transform_7(%arg0: i32, %arg1: i32) -> (i32, i32, i32) {
    %c0_i32 = arith.constant 0 : i32
    %c0_i32_0 = arith.constant 0 : i32
    %c0_i32_1 = arith.constant 0 : i32
    return %arg1, %c0_i32, %c0_i32_0 : i32, i32, i32
  }
  func.func @transform_8(%arg0: i32, %arg1: i32) -> (i32, i32, i32) {
    %c0_i32 = arith.constant 0 : i32
    %c0_i32_0 = arith.constant 0 : i32
    %c0_i32_1 = arith.constant 0 : i32
    return %arg1, %c0_i32, %c0_i32_0 : i32, i32, i32
  }
  func.func @transform_9(%arg0: i32, %arg1: i32) -> (i32, i32, i32) {
    %c0_i32 = arith.constant 0 : i32
    %c0_i32_0 = arith.constant 0 : i32
    %c0_i32_1 = arith.constant 0 : i32
    return %arg1, %c0_i32, %c0_i32_0 : i32, i32, i32
  }
  func.func @transform_10(%arg0: i32, %arg1: i32) -> (i32, i32, i32) {
    %c0_i32 = arith.constant 0 : i32
    %c0_i32_0 = arith.constant 0 : i32
    %c0_i32_1 = arith.constant 0 : i32
    return %arg1, %c0_i32, %c0_i32_0 : i32, i32, i32
  }
  func.func @transform_11(%arg0: i32, %arg1: i32) -> (i32, i32, i32) {
    %c0_i32 = arith.constant 0 : i32
    %c0_i32_0 = arith.constant 0 : i32
    %c0_i32_1 = arith.constant 0 : i32
    return %arg1, %c0_i32, %c0_i32_0 : i32, i32, i32
  }
  func.func @transform_12(%arg0: i32, %arg1: i32) -> (i32, i32, i32) {
    %c0_i32 = arith.constant 0 : i32
    %c0_i32_0 = arith.constant 0 : i32
    %c0_i32_1 = arith.constant 0 : i32
    return %arg0, %c0_i32, %c0_i32_0 : i32, i32, i32
  }
}

</mosaic_0001>

<bundles_post_ra>
// kernel: tpu_custom_call.1
= control target key start
LH: loop header
LB: loop body
LE: loop exit
PB: predicated region body
PF: predicated region fallthrough
CT: control target
= control target key end

     0   :  { %s2058_s0 = inlined_call_operand.vmem [shape: f32[4,8,8], index: 0, kind: input, shape index: {}]   ;;  %s2059_s1 = inlined_call_operand.vmem [shape: f32[3,1,8], index: 1, kind: input, shape index: {}]   ;;  %s2060_s2 = inlined_call_operand.vmem [shape: bf16[3,8,32], index: 2, kind: input, shape index: {}]   ;;  %s2061_s3 = inlined_call_operand.vmem [shape: f32[3,1,32], index: 3, kind: input, shape index: {}]   ;;  %s2062_s4 = inlined_call_operand.vmem [shape: bf16[3,24,8], index: 4, kind: input, shape index: {}]   ;;  %s2063_s5 = inlined_call_operand.vmem [shape: f32[3,8,1], index: 5, kind: input, shape index: {}]   ;;  %s2064_s6 = inlined_call_operand.vmem [shape: bf16[3,16,16], index: 6, kind: input, shape index: {}]   ;;  %s2065_s7 = inlined_call_operand.vmem [shape: f32[3,1,16], index: 7, kind: input, shape index: {}]   ;;  %s2066_s8 = inlined_call_operand.vmem [shape: bf16[3,16,48], index: 8, kind: input, shape index: {}]   ;;  %s2067_s9 = inlined_call_operand.vmem [shape: f32[3,1,48], index: 9, kind: input, shape index: {}]   ;;  %s2068_s10 = inlined_call_operand.vmem [shape: bf16[3,16,8], index: 10, kind: input, shape index: {}]   ;;  %s2069_s11 = inlined_call_operand.vmem [shape: f32[3,1,8], index: 11, kind: input, shape index: {}]   ;;  %s2070_s12 = inlined_call_operand.hbm [shape: f32[4,8,8], index: 12, kind: output, shape index: {}]  }
   0x1   :  { %2086 = sst [smem:[#allocation19_spill]] %s2058_s0 }
   0x2   :  { %2087 = sst [smem:[#allocation20_spill]] %s2060_s2 }
   0x3   :  { %2088 = sst [smem:[#allocation21_spill]] %s2062_s4 }
   0x4   :  { %2089 = sst [smem:[#allocation22_spill]] %s2069_s11 }
   0x5   :  { %2090 = sst [smem:[#allocation23_spill]] %s2070_s12 }
   0x6   :  { %17 = vsyncpa [#allocation4], 0 }
   0x7   :  { %19 = vsyncpa [#allocation4 + $0x1], 0  ;;  %s1747_s21 = smov 0   ;;  %s1749_s22 = smov 0  }
   0x8   :  { %s1751_s23 = smov 0   ;;  %s1753_s24 = smov 0  }
   0x9   :  { %s1755_s25 = smov 0   ;;  %s1757_s26 = smov 0  }
   0xa   :  { %s1759_s27 = smov 0   ;;  %s1761_s28 = smov 0  }
   0xb LB: > { %2091 = sst [smem:[#allocation6_spill]] %s1641_s21  ;;  %s1355_s29 = sadd.s32 4294967295, %s1669_s28   ;;  %s1669_s28 = sphi %s1761_s28, %s25_s28   ;;  %s1665_s27 = sphi %s1759_s27, %s2131_s27   ;;  %s1661_s26 = sphi %s1757_s26, %s2130_s26   ;;  %s1657_s25 = sphi %s1755_s25, %s2129_s25   ;;  %s1653_s24 = sphi %s1753_s24, %s2128_s24   ;;  %s1649_s23 = sphi %s1751_s23, %s2127_s23   ;;  %s1645_s22 = sphi %s1749_s22, %s2126_s22   ;;  %s1641_s21 = sphi %s1747_s21, %s2125_s21  }
   0xc   : > { %2092 = sst [smem:[#allocation7_spill]] %s1645_s22  ;;  %s1356_s30 = sadd.s32 4294967294, %s1669_s28  }
   0xd   : > { %2093 = sst [smem:[#allocation8_spill]] %s1649_s23  ;;  %s34_s13 = sadd.s32 1, %s1661_s26 }
   0xe   : > { %2094 = sst [smem:[#allocation9_spill]] %s1653_s24  ;;  %p35_p0 = scmp.ge.s32.totalorder %s34_s13, 3 }
   0xf   : > { %2095 = sst [smem:[#allocation10_spill]] %s1657_s25  ;;  %s37_s14 = sadd.s32 1, %s1665_s27 }
  0x10   : > { %2096 = sst [smem:[#allocation11_spill]] %s1661_s26  ;;  %p366_p1 = scmp.ne.s32.totalorder %s1649_s23, %s1645_s22 }
  0x11   : > { %2097 = sst [smem:[#allocation12_spill]] %s1665_s27  ;;  %p367_p2 = scmp.eq.s32.totalorder %s1355_s29, 5 }
  0x12   : > { %2098 = sst [smem:[#allocation13_spill]] %s1669_s28  ;;  %s2133_s13 = smov (%p35_p0, %s34_s13), 0 }
  0x13   : > { %2099 = sst [smem:[#allocation14_spill]] %s2133_s13  ;;  %s2135_s14 = smov (!%p35_p0, %s37_s14), %s1665_s27 }
  0x14   : > { %p1796_p3 = por %p367_p2, %p366_p1  ;;  %p372_p4 = scmp.ne.s32.totalorder %s1645_s22, %s1641_s21 }
  0x15   : > { %p39_p5 = scmp.ge.s32.totalorder %s2135_s14, 2  ;;  %p373_p6 = scmp.eq.s32.totalorder %s1356_s30, 5 }
  0x16   : > { %s2100_s15 = scalar_select %p1796_p3, 1, 0 }
  0x17   : > { %p1359_p7 = scmp.ge.s32.totalorder %s1669_s28, 1  ;;  %p476_p8 = scmp.lt.s32.totalorder %s1669_s28, 7 }
  0x18   : > { %2101 = sst [smem:[#allocation15_spill]] %s2100_s15  ;;  %s2137_s14 = smov (%p39_p5, %s2135_s14), 0 }
  0x19   : > { %2102 = sst [smem:[#allocation16_spill]] %s2137_s14  ;;  %p1806_p9 = por %p373_p6, %p372_p4 }
  0x1a   : > { %p477_p10 = pnand %p1359_p7, %p476_p8  ;;  %s353_s17 = ssub.s32 %s1665_s27, %s2137_s14 }
  0x1b   : > { %s2103_s16 = scalar_select %p1806_p9, 1, 0 }
  0x1c   : > { %s356_s18 = sadd.s32 1, %s1649_s23  ;;  %p354_p11 = scmp.eq.s32.totalorder %s353_s17, 0 }
  0x1d   : > { %2104 = sst [smem:[#allocation17_spill]] %s2103_s16  ;;  %480 = sbr.rel (%p477_p10) target bundleno = 1839 (0x72f), region = 68 }
  0x1e   : > { %s1814_s19 = scalar_select %p354_p11, %s1649_s23, %s356_s18  }
  0x1f   : > { %s2074_s20 = sand.u32 (!%p477_p10), 1, %s1645_s22   ;;  %s1361_s29 = sshll.u32 (!%p477_p10), %s1657_s25, 1 }
  0x20   : > { %2105 = sst [smem:[#allocation18_spill]] %s1814_s19  ;;  %s1360_s30 = sshll.u32 (!%p477_p10), %s2074_s20, 4 }
  0x21   : > { %p562_p12 = scmp.lt.s32.totalorder (!%p477_p10), %s1361_s29, 3  ;;  %p567_p13 = scmp.lt.s32.totalorder (!%p477_p10), %s1653_s24, 2 }
  0x22   : > { %s2106_s0 = sld [smem:[#allocation19_spill]]  ;;  %s1876_s12 = scalar_lea.vmem [#allocation3], %s1360_s30 }
  0x23   : > { %s2139_s29 = smov (!%p562_p12, %s1361_s29), 3  ;;  %s2107_s2 = sld [smem:[#allocation20_spill]] }
  0x24   : > { %s1822_s13 = scalar_select %p567_p13, %s1653_s24, 2 }
  0x25   : > { %s1362_s17 = sshll.u32 %s2139_s29, 3  ;;  %s2108_s4 = sld [smem:[#allocation21_spill]] }
  0x26   : > { %s1363_s23 = sshll.u32 %s1822_s13, 2  ;;  %s1453_s25 = smul.u32 12, %s1822_s13 }
  0x27   : > { %s1841_s24 = sshll.u32 %s1822_s13, 3  ;;  %s601_s26 = scalar_lea.vmem %s2067_s9, %s1822_s13 }
  0x28   : > { %s565_s27 = scalar_lea.vmem %s2106_s0, %s1362_s17  ;;  %s590_s18 = scalar_lea.vmem %s2064_s6, %s1841_s24 }
  0x29   : > { %s573_s22 = scalar_lea.vmem %s2107_s2, %s1363_s23  ;;  %s598_s29 = scalar_lea.vmem %s2066_s8, %s1841_s24 }
  0x2a   : > { %s2109_s16 = sld [smem:[#allocation22_spill]] }
  0x2b   : > { %s1850_s21 = scalar_lea.vmem %s2108_s4, %s1453_s25  ;;  %s606_s25 = scalar_lea.vmem %s2068_s10, %s1841_s24 }
  0x2c   : > { %s2110_s23 = sld [smem:[#allocation9_spill]] }
  0x30   : > { %s609_s17 = scalar_lea.vmem %s2109_s16, %s1822_s13 }
  0x32   : > { %p1372_p0 = scmp.ne.s32.totalorder %s2110_s23, 0 }
  0x34   : > { %615 = sbr.rel (%p1372_p0) target bundleno = 59 (0x3b), region = 72 }
  0x39   : > { %v616_v0 = vld [vmem:[%s565_s27] sm:$0xff]  ;;  %vm618_vm0 = vcmask 64512   ;;  %v617_v1 = vld [vmem:[%s565_s27 + $0x8] sm:$0xff] }
  0x3a   : > { %619 = vst.msk [vmem:[#allocation2] sm:$0xff] %vm618_vm0, %v616_v0  ;;  %620 = vst.msk [vmem:[#allocation2 + $0x8] sm:$0xff] %vm618_vm0, %v617_v1 }
  0x3b PF: > { %vm625_vm1 = vcmask 64512   ;;  %v651_v8 = vld [vmem:[%s573_s22] sm:$0xf]  ;;  %vm662_vm2 = vcmask 1043456   ;;  %v1671_v9 = vmov 0.0   ;;  %vm1672_vm3 = vmmov 0   ;;  %s2111_s4 = scalar_lea.vmem %s2059_s1, %s1822_s13  ;;  %s2112_s28 = scalar_lea.vmem %s2061_s3, %s1822_s13 }
  0x3c   : > { %1415 = vmatprep.subr.bf16.mxu0 %v1671_v9  ;;  %v664_v10 = vsel %vm662_vm2, %v651_v8, 0  ;;  %1417 = vmatprep.mubr.msk.bf16.mxu0 %vm1672_vm3, %v1671_v9  ;;  %v1373_v20 = vld [vmem:[%s2111_s4] ss:$0 sm:$0xff]  ;;  %v1673_v26 = vmov 0   ;;  %v1537_v35 = vld [vmem:[%s1850_s21 + $0x8] ss:$0 sps:$4 sm:$0xff]   ;;  %s2114_s2 = scalar_lea.vmem %s2065_s7, %s1822_s13 }
  0x3d   : > { %1416 = vmatpush3.bf16.msra.mxu0 %v664_v10  ;;  %v1536_v25 = vld [vmem:[%s1850_s21] sm:$0xff]   ;;  %1535 = vset.pattern.permute.xlu0 %v1673_v26  ;;  %s2113_s21 = scalar_lea.vmem %s2063_s5, %s1841_s24  ;;  %s1674_s15 = smov 127   ;;  %vm836_vm4 = vcmask 7168   ;;  %vm849_vm5 = vcmask 121856   ;;  %vm890_vm6 = vcmask 130048  }
  0x3e   : > { %1423 = vmatprep.mubr.msk.bf16.mxu1 %vm625_vm1, %v1536_v25  ;;  %v1374_v27 = vld [vmem:[%s2112_s28] ss:$0 sm:$0xff]  ;;  %s1675_s11 = smov 1   ;;  %s1676_s22 = smov 16  }
  0x3f   : > { %v854_v39 = vld [vmem:[%s2113_s21] sm:$0xff]  ;;  %s1677_s27 = smov 96   ;;  %s2116_s21 = sld [smem:[#allocation9_spill]] }
  0x40   : > { %v1538_v46 = vld [vmem:[%s590_s18] sm:$0xff]  }
  0x41   : > { %v621_v2 = vld [vmem:[#allocation2] sm:$0xff]  ;;  %v622_v3 = vld [vmem:[#allocation2 + $0x8] sm:$0xff] }
  0x42   : > { %v623_v4 = vmul.f32 %v621_v2, %v621_v2  ;;  %v624_v5 = vmul.f32 %v622_v3, %v622_v3 }
  0x44   : > { %v626_v6 = vsel %vm625_vm1, %v623_v4, 0.0  ;;  %v629_v7 = vsel %vm625_vm1, %v624_v5, 0.0 }
  0x45   : > { %627 = vadd.xlane.f32.xlu0 %v626_v6  ;;  %p1391_p1 = scmp.ne.s32.totalorder %s2116_s21, 2 }
  0x49   : > { %630 = vadd.xlane.f32.xlu0 %v629_v7 }
  0x5f   : > { %857 = vperm.xlu0 %1535, %v854_v39  }
  0xce   : > { %v628_v11 = vpop.xlane.xlu0 %627 }
  0xcf   : > { %v633_v12 = vmul.f32 0.125, %v628_v11 }
  0xd1   : > { %v635_v13 = vadd.f32 1e-05, %v633_v12 }
  0xd2   : > { %v631_v14 = vpop.xlane.xlu0 %630 }
  0xd3   : > { %1541 = vrsqrt.f32 %v635_v13  ;;  %v634_v15 = vmul.f32 0.125, %v631_v14  ;;  %v1539_v14 = vld [vmem:[%s598_s29] sm:$0xff]  }
  0xd5   : > { %v636_v16 = vadd.f32 1e-05, %v634_v15 }
  0xd7   : > { %1543 = vrsqrt.f32 %v636_v16  ;;  %v1382_v16 = vld [vmem:[%s2114_s2] ss:$0 sm:$0xff] }
  0xda   : > { %v858_v53 = vpop.permute.xlu0 %857 }
  0xe0   : > { %v1542_v17 = vpop.eup %1541 }
  0xe1   : > { %v639_v18 = vmul.f32 %v1542_v17, %v621_v2 }
  0xe3   : > { %v648_v22 = vmul.f32 %v1373_v20, %v639_v18 }
  0xe4   : > { %v1544_v19 = vpop.eup %1543 }
  0xe5   : > { %v640_v21 = vmul.f32 %v1544_v19, %v622_v3 }
  0xe7   : > { %v649_v23 = vmul.f32 %v1373_v20, %v640_v21 }
  0xe9   : > { %v650_v24 = vpack.c.bf16 %v649_v23, %v648_v22  ;;  %v1385_v22 = vld [vmem:[%s601_s26] ss:$0 sm:$0xff]  ;;  %s1678_s26 = smov 112  }
  0xeb   : > { %1418 = vmatmul.mubr.msk.bf16.vlgmr.msra.gmra.mxu0 %vm625_vm1, %v650_v24 }
  0xec   : > { %1429 = vmatprep.mubr.msk.bf16.mxu0 %vm625_vm1, %v1536_v25 }
 0x1ab   : > { %v700_v28 = vpop.f32.mrf.mxu0 }
 0x1ac   : > { %v1899_v29 = vadd.f32 %v1374_v27, %v700_v28 }
 0x1ad   : > { %v1419_v30 = vpop.f32.mrf.mxu0 }
 0x1ae   : > { %v707_v31 = vpack.c.bf16 %v1899_v29, %v1899_v29 }
 0x1af   : > { %v703_v32 = vpop.f32.mrf.mxu0 }
 0x1b0   : > { %v1903_v33 = vadd.f32 %v1374_v27, %v703_v32  ;;  %1451 = vmatprep.subr.msk.bf16.mxu1 %vm662_vm2, %v707_v31  ;;  %v727_v34 = vsel %vm662_vm2, %v707_v31, 0 }
 0x1b1   : > { %v1420_v36 = vpop.f32.mrf.mxu0  ;;  %1422 = vmatpush3.bf16.msra.mxu1 %v727_v34 }
 0x1b2   : > { %v708_v37 = vpack.c.bf16 %v1903_v33, %v1903_v33  ;;  %1433 = vmatprep.subr.bf16.mxu1 %v1671_v9 }
 0x1b4   : > { %1424 = vmatmul.mubr.msk.bf16.vlgmr.msra.gmra.mxu1 %vm625_vm1, %v1537_v35  ;;  %1452 = vmatprep.subr.msk.bf16.mxu0 %vm662_vm2, %v708_v37  ;;  %v778_v38 = vsel %vm662_vm2, %v708_v37, 0  ;;  %v1062_v37 = vsub.f32 0.0, %v1903_v33 }
 0x1b5   : > { %1428 = vmatpush3.bf16.msra.mxu0 %v778_v38  ;;  %1435 = vmatprep.mubr.msk.bf16.mxu1 %vm1672_vm3, %v1671_v9 }
 0x1b6   : > { %1439 = vmatprep.subr.bf16.mxu0 %v1671_v9  ;;  %1434 = vmatpush3.bf16.msra.mxu1 %v1538_v46  ;;  %v1065_v38 = vmul.f32 1.442695, %v1062_v37 }
 0x1b7   : > { %1445 = vmatprep.subr.bf16.mxu1 %v1671_v9 }
 0x1b8   : > { %1430 = vmatmul.mubr.msk.bf16.vlgmr.msra.gmra.mxu0 %vm625_vm1, %v1537_v35  ;;  %v1061_v35 = vsub.f32 0.0, %v1899_v29 }
 0x1b9   : > { %1441 = vmatprep.mubr.msk.bf16.mxu0 %vm1672_vm3, %v1671_v9  ;;  %1440 = vmatpush3.bf16.msra.mxu0 %v1539_v14 }
 0x1ba   : > { %v1063_v36 = vmul.f32 1.442695, %v1061_v35 }
 0x274   : > { %v1425_v40 = vpop.f32.mrf.mxu1 }
 0x275   : > { %843 = vrot.lane.b32.xlu1 %v1425_v40, %s1674_s15 }
 0x276   : > { %v763_v41 = vpop.f32.mrf.mxu1 }
 0x278   : > { %v1426_v42 = vpop.f32.mrf.mxu1  ;;  %v1431_v43 = vpop.f32.mrf.mxu0 }
 0x279   : > { %830 = vrot.lane.b32.xlu1 %v763_v41, %s1675_s11 }
 0x27a   : > { %v814_v44 = vpop.f32.mrf.mxu0  ;;  %v766_v49 = vpop.f32.mrf.mxu1 }
 0x27c   : > { %v1432_v45 = vpop.f32.mrf.mxu0 }
 0x27d   : > { %832 = vrot.lane.b32.xlu1 %v814_v44, %s1675_s11 }
 0x27e   : > { %v817_v58 = vpop.f32.mrf.mxu0 }
 0x281   : > { %845 = vrot.lane.b32.xlu1 %v1431_v43, %s1674_s15 }
 0x2e7   : > { %v844_v47 = vpop.permute.xlu1 %843 }
 0x2e8   : > { %v850_v52 = vsel %vm849_vm5, %v844_v47, 0.0 }
 0x2eb   : > { %v831_v48 = vpop.permute.xlu1 %830 }
 0x2ec   : > { %v837_v50 = vsel %vm836_vm4, 0.0, %v831_v48 }
 0x2ed   : > { %v839_v51 = vadd.f32 %v837_v50, %v766_v49 }
 0x2ef   : > { %v852_v54 = vadd.f32 %v850_v52, %v839_v51  ;;  %v833_v55 = vpop.permute.xlu1 %832  ;;  %v1540_v51 = vld [vmem:[%s606_s25] sm:$0xff]  }
 0x2f0   : > { %v838_v56 = vsel %vm836_vm4, 0.0, %v833_v55 }
 0x2f1   : > { %v860_v57 = vadd.f32 %v858_v53, %v852_v54  ;;  %v840_v59 = vadd.f32 %v838_v56, %v817_v58 }
 0x2f3   : > { %v862_v60 = vsub.f32 0.0, %v860_v57  ;;  %v846_v61 = vpop.permute.xlu1 %845 }
 0x2f4   : > { %v851_v62 = vsel %vm849_vm5, %v846_v61, 0.0 }
 0x2f5   : > { %v864_v63 = vmul.f32 1.442695, %v862_v60  ;;  %v853_v0 = vadd.f32 %v851_v62, %v840_v59 }
 0x2f7   : > { %1545 = vpow2.f32 %v864_v63  ;;  %v861_v1 = vadd.f32 %v858_v53, %v853_v0 }
 0x2f9   : > { %v863_v2 = vsub.f32 0.0, %v861_v1 }
 0x2fb   : > { %v866_v3 = vmul.f32 1.442695, %v863_v2 }
 0x2fd   : > { %1547 = vpow2.f32 %v866_v3 }
 0x304   : > { %v1546_v4 = vpop.eup %1545 }
 0x305   : > { %v868_v5 = vadd.f32 1.0, %v1546_v4 }
 0x307   : > { %1549 = vrcp.f32 %v868_v5 }
 0x30a   : > { %v1548_v6 = vpop.eup %1547 }
 0x30b   : > { %v869_v7 = vadd.f32 1.0, %v1548_v6 }
 0x30d   : > { %1551 = vrcp.f32 %v869_v7 }
 0x30e   : > { %1553 = vpow2.f32 %v1063_v36 }
 0x30f   : > { %1555 = vpow2.f32 %v1065_v38 }
 0x314   : > { %v1550_v8 = vpop.eup %1549 }
 0x315   : > { %v872_v11 = vmul.f32 %v1550_v8, %v860_v57 }
 0x31a   : > { %v1552_v10 = vpop.eup %1551 }
 0x31b   : > { %v873_v12 = vmul.f32 %v1552_v10, %v861_v1  ;;  %v1554_v39 = vpop.eup %1553 }
 0x31c   : > { %v1067_v40 = vadd.f32 1.0, %v1554_v39  ;;  %v1556_v43 = vpop.eup %1555 }
 0x31d   : > { %v874_v13 = vpack.c.bf16 %v873_v12, %v872_v11  ;;  %v1068_v46 = vadd.f32 1.0, %v1556_v43 }
 0x31e   : > { %1557 = vrcp.f32 %v1067_v40 }
 0x31f   : > { %1436 = vmatmul.mubr.msk.bf16.vlgmr.msra.gmra.mxu1 %vm890_vm6, %v874_v13  ;;  %1559 = vrcp.f32 %v1068_v46 }
 0x320   : > { %1447 = vmatprep.mubr.msk.bf16.mxu1 %vm1672_vm3, %v1671_v9  ;;  %1446 = vmatpush3.bf16.msra.mxu1 %v1540_v51 }
 0x32b   : > { %v1558_v47 = vpop.eup %1557 }
 0x32c   : > { %v1071_v48 = vmul.f32 %v1558_v47, %v1899_v29  ;;  %v1560_v49 = vpop.eup %1559 }
 0x32d   : > { %v1072_v50 = vmul.f32 %v1560_v49, %v1903_v33 }
 0x3df   : > { %v928_v15 = vpop.f32.mrf.mxu1 }
 0x3e0   : > { %v1944_v19 = vadd.f32 %v1382_v16, %v928_v15 }
 0x3e1   : > { %v1437_v17 = vpop.f32.mrf.mxu1 }
 0x3e3   : > { %v931_v18 = vpop.f32.mrf.mxu1 }
 0x3e4   : > { %v1946_v20 = vadd.f32 %v1382_v16, %v931_v18 }
 0x3e5   : > { %v1438_v21 = vpop.f32.mrf.mxu1 }
 0x3e6   : > { %v935_v9 = vpack.c.bf16 %v1946_v20, %v1944_v19 }
 0x3e8   : > { %1442 = vmatmul.mubr.msk.bf16.vlgmr.msra.gmra.mxu0 %vm890_vm6, %v935_v9 }
 0x4a8   : > { %v988_v23 = vpop.f32.mrf.mxu0 }
 0x4a9   : > { %v1956_v24 = vadd.f32 %v1385_v22, %v988_v23 }
 0x4aa   : > { %v1443_v25 = vpop.f32.mrf.mxu0 }
 0x4ab   : > { %1023 = vrot.lane.b32.xlu1 %v1956_v24, %s1676_s22  ;;  %v997_v52 = vmul.f32 1.442695, %v1956_v24  ;;  %vm995_vm8 = vcmp.gt.f32.partialorder %v1956_v24, 20.0 }
 0x4ac   : > { %v991_v26 = vpop.f32.mrf.mxu0 }
 0x4ad   : > { %v1959_v27 = vadd.f32 %v1385_v22, %v991_v26  ;;  %1561 = vpow2.f32 %v997_v52 }
 0x4ae   : > { %v1444_v28 = vpop.f32.mrf.mxu0 }
 0x4af   : > { %1025 = vrot.lane.b32.xlu1 %v1959_v27, %s1676_s22  ;;  %v999_v53 = vmul.f32 1.442695, %v1959_v27  ;;  %vm996_vm10 = vcmp.gt.f32.partialorder %v1959_v27, 20.0 }
 0x4b1   : > { %1563 = vpow2.f32 %v999_v53 }
 0x4ba   : > { %v1562_v54 = vpop.eup %1561 }
 0x4bb   : > { %v1001_v29 = vadd.f32 1.0, %v1562_v54  ;;  %v1004_v33 = vmul.f32 -0.5, %v1562_v54  ;;  %v1007_v60 = vand.u32 2147483647, %v1562_v54 }
 0x4bd   : > { %1565 = vlog2.f32 %v1001_v29  ;;  %v1005_v58 = vadd.f32 1.0, %v1004_v33  ;;  %vm1008_vm7 = vcmp.lt.f32.partialorder %v1007_v60, 0.0004427343 }
 0x4be   : > { %v1564_v55 = vpop.eup %1563 }
 0x4bf   : > { %v1010_v56 = vadd.f32 1.0, %v1564_v55  ;;  %v1013_v59 = vmul.f32 -0.5, %v1564_v55  ;;  %v1006_v63 = vmul.f32 %v1562_v54, %v1005_v58  ;;  %v1016_v1 = vand.u32 2147483647, %v1564_v55 }
 0x4c1   : > { %1567 = vlog2.f32 %v1010_v56  ;;  %v1014_v0 = vadd.f32 1.0, %v1013_v59  ;;  %vm1017_vm9 = vcmp.lt.f32.partialorder %v1016_v1, 0.0004427343 }
 0x4c3   : > { %v1015_v4 = vmul.f32 %v1564_v55, %v1014_v0 }
 0x4ca   : > { %v1566_v57 = vpop.eup %1565 }
 0x4cb   : > { %v1003_v61 = vmul.f32 0.6931472, %v1566_v57 }
 0x4cd   : > { %v1009_v2 = vsel %vm1008_vm7, %v1006_v63, %v1003_v61 }
 0x4ce   : > { %v1568_v62 = vpop.eup %1567  ;;  %v1019_v5 = vsel %vm995_vm8, %v1956_v24, %v1009_v2 }
 0x4cf   : > { %v1012_v3 = vmul.f32 0.6931472, %v1568_v62  ;;  %v1045_v7 = vmul.f32 %v1019_v5, %v1944_v19 }
 0x4d1   : > { %v1018_v6 = vsel %vm1017_vm9, %v1015_v4, %v1012_v3 }
 0x4d2   : > { %v1020_v10 = vsel %vm996_vm10, %v1959_v27, %v1018_v6 }
 0x4d3   : > { %v1046_v13 = vmul.f32 %v1020_v10, %v1946_v20 }
 0x51d   : > { %v1024_v30 = vpop.permute.xlu1 %1023 }
 0x51e   : > { %v1029_v31 = vmul.f32 %v1024_v30, %v1956_v24 }
 0x520   : > { %1033 = vrot.lane.b32.xlu1 %v1029_v31, %s1677_s27 }
 0x521   : > { %v1026_v32 = vpop.permute.xlu1 %1025 }
 0x522   : > { %v1030_v34 = vmul.f32 %v1026_v32, %v1959_v27  ;;  %v1388_v32 = vld [vmem:[%s609_s17] ss:$0 sm:$0xff] }
 0x524   : > { %1035 = vrot.lane.b32.xlu1 %v1030_v34, %s1677_s27 }
 0x592   : > { %v1034_v41 = vpop.permute.xlu1 %1033 }
 0x593   : > { %v1039_v42 = vsel %vm890_vm6, %v1034_v41, 0.0 }
 0x594   : > { %1040 = vadd.xlane.f32.xlu1 %v1039_v42 }
 0x596   : > { %v1036_v44 = vpop.permute.xlu1 %1035 }
 0x597   : > { %v1042_v45 = vsel %vm890_vm6, %v1036_v44, 0.0 }
 0x598   : > { %1043 = vadd.xlane.f32.xlu0 %v1042_v45 }
 0x5a5   : > { %1075 = vrot.lane.b32.xlu1 %v1071_v48, %s1678_s26 }
 0x5ae   : > { %1077 = vrot.lane.b32.xlu0 %v1072_v50, %s1678_s26 }
 0x61d   : > { %v1041_v8 = vpop.xlane.xlu1 %1040 }
 0x61e   : > { %v1047_v11 = vmul.f32 %v1045_v7, %v1041_v8 }
 0x620   : > { %v1049_v12 = vsub.f32 0.0, %v1047_v11 }
 0x621   : > { %v1044_v14 = vpop.xlane.xlu0 %1043  ;;  %v1076_v27 = vpop.permute.xlu1 %1075 }
 0x622   : > { %v1051_v15 = vmul.f32 1.442695, %v1049_v12  ;;  %v1048_v16 = vmul.f32 %v1046_v13, %v1044_v14 }
 0x624   : > { %1569 = vpow2.f32 %v1051_v15  ;;  %v1050_v17 = vsub.f32 0.0, %v1048_v16 }
 0x625   : > { %v1078_v20 = vpop.permute.xlu0 %1077 }
 0x626   : > { %v1053_v18 = vmul.f32 1.442695, %v1050_v17 }
 0x628   : > { %1571 = vpow2.f32 %v1053_v18 }
 0x631   : > { %v1570_v21 = vpop.eup %1569 }
 0x632   : > { %v1055_v9 = vadd.f32 1.0, %v1570_v21 }
 0x634   : > { %1573 = vrcp.f32 %v1055_v9 }
 0x635   : > { %v1572_v19 = vpop.eup %1571 }
 0x636   : > { %v1056_v22 = vadd.f32 1.0, %v1572_v19 }
 0x638   : > { %1575 = vrcp.f32 %v1056_v22 }
 0x641   : > { %v1574_v23 = vpop.eup %1573 }
 0x642   : > { %v1059_v24 = vmul.f32 %v1574_v23, %v1047_v11 }
 0x644   : > { %v1081_v28 = vmul.f32 %v1076_v27, %v1059_v24 }
 0x645   : > { %v1576_v25 = vpop.eup %1575 }
 0x646   : > { %v1060_v26 = vmul.f32 %v1576_v25, %v1048_v16 }
 0x648   : > { %v1082_v30 = vmul.f32 %v1078_v20, %v1060_v26 }
 0x64a   : > { %v1083_v31 = vpack.c.bf16 %v1082_v30, %v1081_v28 }
 0x64c   : > { %1448 = vmatmul.mubr.msk.bf16.vlgmr.msra.gmra.mxu1 %vm890_vm6, %v1083_v31 }
 0x70c   : > { %v1136_v34 = vpop.f32.mrf.mxu1 }
 0x70d   : > { %v1137_v35 = vadd.f32 %v1388_v32, %v1136_v34 }
 0x70e   : > { %v1449_v36 = vpop.f32.mrf.mxu1 }
 0x70f   : > { %1143 = vst.msk [vmem:[#allocation2] sm:$0xff] %vm625_vm1, %v1137_v35  ;;  %1148 = sbr.rel (%p1391_p1) target bundleno = 1813 (0x715), region = 76 }
 0x710   : > { %v1139_v37 = vpop.f32.mrf.mxu1 }
 0x711   : > { %v1140_v38 = vadd.f32 %v1388_v32, %v1139_v37 }
 0x712   : > { %v1450_v39 = vpop.f32.mrf.mxu1 }
 0x713   : > { %1144 = vst.msk [vmem:[#allocation2 + $0x8] sm:$0xff] %vm625_vm1, %v1140_v38 }
 0x714   : > { %1149 = vst.msk [vmem:[%s1876_s12] sm:$0xff] %vm625_vm1, %v1137_v35  ;;  %1150 = vst.msk [vmem:[%s1876_s12 + $0x8] sm:$0xff] %vm625_vm1, %v1140_v38 }
 0x715 PF: > { %s2117_s13 = sld [smem:[#allocation10_spill]]  ;;  %s1165_s23 = sshll.u32 %s1876_s12, 4  ;;  %s2003_s23 = int_to_ptr.vmem [resolvable:$true] %s1165_s23 }
 0x716   : > { %s2118_s17 = sld [smem:[#allocation7_spill]]  ;;  %s1577_s29 = scalar_lea.vmem %s2003_s23, 256 }
 0x717   : > { %s2120_s18 = sld [smem:[#allocation23_spill]]  ;;  %p1578_p2 = scmp.ne.s32.totalorder %s2003_s23, %s1577_s29 }
 0x718   : > { %s1679_s4 = smov [#allocation3]  }
 0x719   : > { %p1579_p4 = pnand %p1578_p2, %p1796_p3  ;;  %s1581_s22 = sshll.u32 %s1679_s4, 4  ;;  %s1582_s22 = int_to_ptr.vmem [resolvable:$false] %s1581_s22 }
 0x71a   : > { %s1583_s27 = scalar_lea.vmem %s1582_s22, 512  ;;  %p1584_p6 = scmp.lt.s32.totalorder %s2003_s23, %s1582_s22 }
 0x71b   : > { %s1400_s11 = sshll.u32 %s2117_s13, 8  ;;  %p1580_p5 = pneg %p1579_p4 }
 0x71c   : > { %s2121_s0 = sand.u32 1, %s2118_s17   ;;  %p1585_p7 = scmp.lt.s32.totalorder %s1583_s27, %s1577_s29 }
 0x71d   : > { %s2000_s16 = scalar_lea.hbm %s2120_s18, %s1400_s11  ;;  %s2007_s2 = scalar_lea.sflag [#allocation4], %s2121_s0 }
 0x71e   : > { %p1586_p8 = por %p1585_p7, %p1584_p6 }
 0x720   : > { %p1587_p10 = pnand %p1586_p8, %p1580_p5 }
 0x722   : > { %1590 = shalt.err (!%p1587_p10)
}
 0x723   : > { %s1591_s12 = scalar_lea.hbm %s2000_s16, 256  ;;  %s1595_s19 = scalar_lea.hbm %s2120_s18, 512 }
 0x724   : > { %p1592_p11 = scmp.ne.s32.totalorder %s2000_s16, %s1591_s12  ;;  %p1596_p0 = scmp.lt.s32.totalorder %s2000_s16, %s2120_s18 }
 0x725   : > { %p1597_p1 = scmp.lt.s32.totalorder %s1595_s19, %s1591_s12 }
 0x726   : > { %p1593_p12 = pnand %p1592_p11, %p1796_p3 }
 0x727   : > { %p1598_p2 = por %p1597_p1, %p1596_p0 }
 0x728   : > { %p1594_p13 = pneg %p1593_p12 }
 0x72a   : > { %p1599_p4 = pnand %p1598_p2, %p1594_p13 }
 0x72c   : > { %1602 = shalt.err (!%p1599_p4)
}
 0x72d   : > { %s1680_s30 = smov 128   ;;  %s1681_s21 = smov 8  }
 0x72e   : > { %1454 = dma.vmem_to_hbm [thread:$0]  (%p1796_p3), %s2003_s23, 256, %s2000_s16, %s2007_s2, %s1680_s30, %s1680_s30, %s1681_s21  }
 0x72f PF: > { %s2122_s13 = sld [smem:[#allocation13_spill]] }
 0x730   : > { %s2123_s17 = sld [smem:[#allocation6_spill]] }
 0x735   : > { %p1460_p5 = scmp.ge.s32.totalorder %s2122_s13, 2 }
 0x736   : > { %s1180_s14 = sand.u32 1, %s2123_s17  }
 0x737   : > { %p1457_p6 = pnand %p1460_p5, %p1806_p9  ;;  %s1181_s20 = scalar_lea.sflag [#allocation4], %s1180_s14 }
 0x739   : > { %p1458_p7 = pneg %p1457_p6 }
 0x73b   : > { %1636 = dma.done.wait (%p1458_p7), %s1181_s20, 256  }
 0x73c   : > { %1638 = vsyncadd (%p1458_p7), %s1181_s20, 4294967040  ;;  %s25_s28 = sadd.s32 1, %s2122_s13   ;;  %s2125_s21 = sld [smem:[#allocation7_spill]] }
 0x73d   : > { %p22_p8 = scmp.ge.s32.totalorder %s25_s28, 8   ;;  %s2126_s22 = sld [smem:[#allocation8_spill]] }
 0x73e   : > { %s2127_s23 = sld [smem:[#allocation18_spill]] }
 0x73f   : > { %s2128_s24 = sld [smem:[#allocation11_spill]]  ;;  %24 = sbr.rel (!%p22_p8) target bundleno = 11 (0xb), region = 144 }
 0x740   : > { %s2129_s25 = sld [smem:[#allocation12_spill]] }
 0x741   : > { %s2130_s26 = sld [smem:[#allocation14_spill]] }
 0x742   : > { %s2131_s27 = sld [smem:[#allocation16_spill]] }
 0x744   :  { %1186 = vsyncpa [#allocation4], 1 }
 0x745   :  { %1188 = vsyncpa [#allocation4 + $0x1], 1 }

</bundles_post_ra>
